<compile_context>
chip_gen: v7x
topology: tpu7x:2x2x1
jax: 0.10.0
libtpu: 0.0.40
codegen_flags: <defaults>
</compile_context>

<pallas_src>
from fractions import Fraction

import jax
import jax.numpy as jnp
from jax.experimental import pallas as pl
from jax.experimental.pallas import tpu as pltpu


def _nearest_indices(out_size: int, in_size: int) -> jnp.ndarray:
    # Integer-exact form of torchvision legacy NEAREST: src = floor(dst*in/out).
    # TODO(synk): torch computes with a float scale; for pathological size
    # pairs the float rounding could pick a neighbouring index.
    dst = jnp.arange(out_size, dtype=jnp.int32)
    src = (dst * in_size) // out_size
    return jnp.minimum(src, in_size - 1)


def _pick_time_block(T: int, C: int, H_in: int, W_in: int,
                     H_out: int, W_out: int, in_itemsize: int,
                     max_tb: int = 8,
                     vmem_budget_bytes: int = 24 * 1024 * 1024) -> int:
    """Largest divisor Tb of T such that
       (a) double-buffered input (native dtype) / output (f32) blocks fit a
           conservative VMEM budget (safe for v7x as well as v5e/v6e),
       (b) Tb <= max_tb, and
       (c) the grid keeps >= 2 steps whenever T >= 2 (v7x has 2 TensorCores)."""
    if T <= 1:
        return 1
    per_frame = C * (2 * (H_in * W_in * in_itemsize) + 2 * (H_out * W_out * 4))
    cap = max(1, min(max_tb, vmem_budget_bytes // max(per_frame, 1), T // 2))
    best = 1
    for tb in range(1, cap + 1):
        if T % tb == 0:
            best = tb
    return best


def _make_resize_kernel(h_first: bool):
    inv255 = 1.0 / 255.0

    def kernel(x_ref, sh_ref, swt_ref, o_ref):
        # x_ref:   (Tb, C, H_in, W_in)    native-dtype pixels
        # sh_ref:  (H_out, H_in)          bf16 one-hot row selection
        # swt_ref: (W_in, W_out)          bf16 one-hot column selection (transposed)
        # o_ref:   (C, Tb, H_out, W_out)  f32
        Tb, C = x_ref.shape[0], x_ref.shape[1]
        sh = sh_ref[...]
        swt = swt_ref[...]
        # Static unroll over the frames in this block: strictly 2-D MXU matmuls,
        # no in-kernel reshapes or transposes.
        for j in range(Tb):
            for c in range(C):
                # VPU cast to bf16 (exact for integer pixel values 0..255).
                # TODO(synk): non-integer float inputs round to bf16 here.
                frame = x_ref[j, c].astype(jnp.bfloat16)     # (H_in, W_in)
                if h_first:
                    tmp = jnp.dot(sh, frame, preferred_element_type=jnp.float32)
                    res = jnp.dot(tmp.astype(jnp.bfloat16), swt,
                                  preferred_element_type=jnp.float32)
                else:
                    tmp = jnp.dot(frame, swt, preferred_element_type=jnp.float32)
                    res = jnp.dot(sh, tmp.astype(jnp.bfloat16),
                                  preferred_element_type=jnp.float32)
                # Gathered integer pixels are exact; apply the 1/255 scale once,
                # in f32, on the small output tile (fused with the store).
                o_ref[c, j] = (res * inv255).astype(o_ref.dtype)

    return kernel


def default_kinetics_transform(x: jnp.ndarray,
                               height: int = 180,
                               ratio: Fraction = Fraction(10, 7)) -> jnp.ndarray:
    """x: (T, C, H_in, W_in), pixel values 0..255 (integer-valued, e.g. decoded uint8)."""
    T, C, H_in, W_in = x.shape
    H_out = int(height)
    W_out = int(ratio * H_out)          # matches torch: int(Fraction * h) truncates

    # One-hot selection matrices (glue, plain JAX). bf16 0/1 values are exact.
    src_h = _nearest_indices(H_out, H_in)                        # (H_out,)
    src_w = _nearest_indices(W_out, W_in)                        # (W_out,)
    S_h = jax.nn.one_hot(src_h, H_in, dtype=jnp.bfloat16)        # (H_out, H_in)
    S_wT = jax.nn.one_hot(src_w, W_in, dtype=jnp.bfloat16).T     # (W_in, W_out)

    # Feed the kernel the input in its native float dtype (no extra wrapper
    # cast pass over HBM); integer dtypes are converted once to bf16.
    if jnp.issubdtype(x.dtype, jnp.floating):
        x_in = x
    else:
        x_in = x.astype(jnp.bfloat16)
    in_itemsize = jnp.dtype(x_in.dtype).itemsize

    Tb = _pick_time_block(T, C, H_in, W_in, H_out, W_out, in_itemsize)
    grid = (T // Tb,)

    # Contract the axis that shrinks the array first (per-frame matmul cost).
    cost_h_first = H_out * H_in * W_in + H_out * W_in * W_out
    cost_w_first = H_in * W_in * W_out + H_in * H_out * W_out
    h_first = cost_h_first <= cost_w_first

    flops = 2 * T * C * min(cost_h_first, cost_w_first)
    bytes_accessed = (T * C * H_in * W_in * in_itemsize   # input (native dtype)
                      + T * C * H_out * W_out * 4         # f32 output
                      + H_out * H_in * 2 + W_in * W_out * 2)

    out = pl.pallas_call(
        _make_resize_kernel(h_first),
        out_shape=jax.ShapeDtypeStruct((C, T, H_out, W_out), jnp.float32),
        grid_spec=pltpu.PrefetchScalarGridSpec(
            num_scalar_prefetch=0,
            grid=grid,
            in_specs=[
                pl.BlockSpec((Tb, C, H_in, W_in), lambda i: (i, 0, 0, 0)),
                pl.BlockSpec((H_out, H_in), lambda i: (0, 0)),
                pl.BlockSpec((W_in, W_out), lambda i: (0, 0)),
            ],
            out_specs=pl.BlockSpec((C, Tb, H_out, W_out), lambda i: (0, i, 0, 0)),
        ),
        compiler_params=pltpu.CompilerParams(
            dimension_semantics=("parallel",)),
        cost_estimate=pl.CostEstimate(flops=flops, transcendentals=0,
                                      bytes_accessed=bytes_accessed),
    )(x_in, S_h, S_wT)
    return out


def _reference(x, height, ratio):
    T, C, H_in, W_in = x.shape
    H_out = int(height)
    W_out = int(ratio * H_out)
    src_h = _nearest_indices(H_out, H_in)
    src_w = _nearest_indices(W_out, W_in)
    clip = x.astype(jnp.float32) / 255.0
    frames = clip[:, :, src_h, :][:, :, :, src_w]                # (T, C, H_out, W_out)
    return jnp.transpose(frames, (1, 0, 2, 3))                   # (C, T, H_out, W_out)


if __name__ == "__main__":
    # Small shapes consistent with the module: a short clip of 3-channel frames.
    T, C, H_in, W_in = 4, 3, 12, 16
    height = 16
    ratio = Fraction(10, 7)            # W_out = int(10/7 * 16) = 22

    key = jax.random.PRNGKey(0)
    # Integer pixel values (decoded uint8 video), stored as float as torch sees them.
    x = jax.random.randint(key, (T, C, H_in, W_in), 0, 256,
                           dtype=jnp.int32).astype(jnp.float32)

    out = jax.block_until_ready(
        default_kinetics_transform(x, height=height, ratio=ratio))

    ref = _reference(x, height, ratio)
    assert out.shape == (C, T, height, int(ratio * height)), out.shape
    assert jnp.allclose(out, ref, atol=1e-5, rtol=1e-5), "mismatch vs reference"

    print("KERNEL_OK")
</pallas_src>

<mosaic_0001>
module attributes {stable_mosaic.version = 11 : i64} {
  func.func @kernel(%arg0: i32, %arg1: memref<2x3x12x16xf32, #tpu.memory_space<vmem>>, %arg2: memref<16x12xbf16, #tpu.memory_space<vmem>>, %arg3: memref<16x22xbf16, #tpu.memory_space<vmem>>, %arg4: memref<3x2x16x22xf32, #tpu.memory_space<vmem>>) attributes {dimension_semantics = [#tpu.dimension_semantics<parallel>], iteration_bounds = array<i64: 2>, scalar_prefetch = 0 : i64, scratch_operands = 0 : i64, tpu.core_type = #tpu.core_type<tc>, window_params = [{transform_indices = @transform_0, window_bounds = array<i64: 2, 3, 12, 16>}, {pipeline_mode = #tpu.pipeline_mode<synchronous>, transform_indices = @transform_1, window_bounds = array<i64: 16, 12>}, {pipeline_mode = #tpu.pipeline_mode<synchronous>, transform_indices = @transform_2, window_bounds = array<i64: 16, 22>}, {transform_indices = @transform_3, window_bounds = array<i64: 3, 2, 16, 22>}]} {
    %c0 = arith.constant 0 : index
    %c0_0 = arith.constant 0 : index
    %0 = vector.load %arg2[%c0, %c0_0] : memref<16x12xbf16, #tpu.memory_space<vmem>>, vector<16x12xbf16>
    %c0_1 = arith.constant 0 : index
    %c0_2 = arith.constant 0 : index
    %1 = vector.load %arg3[%c0_1, %c0_2] : memref<16x22xbf16, #tpu.memory_space<vmem>>, vector<16x22xbf16>
    %c0_3 = arith.constant 0 : index
    %c0_4 = arith.constant 0 : index
    %c0_5 = arith.constant 0 : index
    %c0_6 = arith.constant 0 : index
    %2 = vector.load %arg1[%c0_3, %c0_4, %c0_5, %c0_6] : memref<2x3x12x16xf32, #tpu.memory_space<vmem>>, vector<1x1x12x16xf32>
    %3 = vector.shape_cast %2 : vector<1x1x12x16xf32> to vector<12x16xf32>
    %4 = arith.truncf %3 : vector<12x16xf32> to vector<12x16xbf16>
    %cst = arith.constant dense<0.000000e+00> : vector<12x22xf32>
    %5 = tpu.matmul %4, %1, %cst {dimension_numbers = #tpu.dot_dimension_numbers<[1], [0], [0], [1], [0, 0, 1, 1], [], []>} : vector<12x16xbf16>, vector<16x22xbf16>, vector<12x22xf32> -> vector<12x22xf32>
    %6 = arith.truncf %5 : vector<12x22xf32> to vector<12x22xbf16>
    %cst_7 = arith.constant dense<0.000000e+00> : vector<16x22xf32>
    %7 = tpu.matmul %0, %6, %cst_7 {dimension_numbers = #tpu.dot_dimension_numbers<[1], [0], [0], [1], [0, 0, 1, 1], [], []>} : vector<16x12xbf16>, vector<12x22xbf16>, vector<16x22xf32> -> vector<16x22xf32>
    %cst_8 = arith.constant 0.00392156886 : f32
    %8 = vector.broadcast %cst_8 : f32 to vector<16x22xf32>
    %9 = arith.mulf %7, %8 : vector<16x22xf32>
    %c0_9 = arith.constant 0 : index
    %c0_10 = arith.constant 0 : index
    %c0_11 = arith.constant 0 : index
    %c0_12 = arith.constant 0 : index
    %10 = vector.load %arg4[%c0_9, %c0_10, %c0_11, %c0_12] : memref<3x2x16x22xf32, #tpu.memory_space<vmem>>, vector<1x1x16x22xf32>
    %11 = vector.shape_cast %10 : vector<1x1x16x22xf32> to vector<16x22xf32>
    %12 = vector.shape_cast %9 : vector<16x22xf32> to vector<1x1x16x22xf32>
    tpu.vector_store %arg4[%c0_9, %c0_10, %c0_11, %c0_12], %12 {strides = array<i32>} : memref<3x2x16x22xf32, #tpu.memory_space<vmem>>, vector<1x1x16x22xf32>,
    %c0_13 = arith.constant 0 : index
    %c1 = arith.constant 1 : index
    %c0_14 = arith.constant 0 : index
    %c0_15 = arith.constant 0 : index
    %13 = vector.load %arg1[%c0_13, %c1, %c0_14, %c0_15] : memref<2x3x12x16xf32, #tpu.memory_space<vmem>>, vector<1x1x12x16xf32>
    %14 = vector.shape_cast %13 : vector<1x1x12x16xf32> to vector<12x16xf32>
    %15 = arith.truncf %14 : vector<12x16xf32> to vector<12x16xbf16>
    %cst_16 = arith.constant dense<0.000000e+00> : vector<12x22xf32>
    %16 = tpu.matmul %15, %1, %cst_16 {dimension_numbers = #tpu.dot_dimension_numbers<[1], [0], [0], [1], [0, 0, 1, 1], [], []>} : vector<12x16xbf16>, vector<16x22xbf16>, vector<12x22xf32> -> vector<12x22xf32>
    %17 = arith.truncf %16 : vector<12x22xf32> to vector<12x22xbf16>
    %cst_17 = arith.constant dense<0.000000e+00> : vector<16x22xf32>
    %18 = tpu.matmul %0, %17, %cst_17 {dimension_numbers = #tpu.dot_dimension_numbers<[1], [0], [0], [1], [0, 0, 1, 1], [], []>} : vector<16x12xbf16>, vector<12x22xbf16>, vector<16x22xf32> -> vector<16x22xf32>
    %cst_18 = arith.constant 0.00392156886 : f32
    %19 = vector.broadcast %cst_18 : f32 to vector<16x22xf32>
    %20 = arith.mulf %18, %19 : vector<16x22xf32>
    %c1_19 = arith.constant 1 : index
    %c0_20 = arith.constant 0 : index
    %c0_21 = arith.constant 0 : index
    %c0_22 = arith.constant 0 : index
    %21 = vector.load %arg4[%c1_19, %c0_20, %c0_21, %c0_22] : memref<3x2x16x22xf32, #tpu.memory_space<vmem>>, vector<1x1x16x22xf32>
    %22 = vector.shape_cast %21 : vector<1x1x16x22xf32> to vector<16x22xf32>
    %23 = vector.shape_cast %20 : vector<16x22xf32> to vector<1x1x16x22xf32>
    tpu.vector_store %arg4[%c1_19, %c0_20, %c0_21, %c0_22], %23 {strides = array<i32>} : memref<3x2x16x22xf32, #tpu.memory_space<vmem>>, vector<1x1x16x22xf32>,
    %c0_23 = arith.constant 0 : index
    %c2 = arith.constant 2 : index
    %c0_24 = arith.constant 0 : index
    %c0_25 = arith.constant 0 : index
    %24 = vector.load %arg1[%c0_23, %c2, %c0_24, %c0_25] : memref<2x3x12x16xf32, #tpu.memory_space<vmem>>, vector<1x1x12x16xf32>
    %25 = vector.shape_cast %24 : vector<1x1x12x16xf32> to vector<12x16xf32>
    %26 = arith.truncf %25 : vector<12x16xf32> to vector<12x16xbf16>
    %cst_26 = arith.constant dense<0.000000e+00> : vector<12x22xf32>
    %27 = tpu.matmul %26, %1, %cst_26 {dimension_numbers = #tpu.dot_dimension_numbers<[1], [0], [0], [1], [0, 0, 1, 1], [], []>} : vector<12x16xbf16>, vector<16x22xbf16>, vector<12x22xf32> -> vector<12x22xf32>
    %28 = arith.truncf %27 : vector<12x22xf32> to vector<12x22xbf16>
    %cst_27 = arith.constant dense<0.000000e+00> : vector<16x22xf32>
    %29 = tpu.matmul %0, %28, %cst_27 {dimension_numbers = #tpu.dot_dimension_numbers<[1], [0], [0], [1], [0, 0, 1, 1], [], []>} : vector<16x12xbf16>, vector<12x22xbf16>, vector<16x22xf32> -> vector<16x22xf32>
    %cst_28 = arith.constant 0.00392156886 : f32
    %30 = vector.broadcast %cst_28 : f32 to vector<16x22xf32>
    %31 = arith.mulf %29, %30 : vector<16x22xf32>
    %c2_29 = arith.constant 2 : index
    %c0_30 = arith.constant 0 : index
    %c0_31 = arith.constant 0 : index
    %c0_32 = arith.constant 0 : index
    %32 = vector.load %arg4[%c2_29, %c0_30, %c0_31, %c0_32] : memref<3x2x16x22xf32, #tpu.memory_space<vmem>>, vector<1x1x16x22xf32>
    %33 = vector.shape_cast %32 : vector<1x1x16x22xf32> to vector<16x22xf32>
    %34 = vector.shape_cast %31 : vector<16x22xf32> to vector<1x1x16x22xf32>
    tpu.vector_store %arg4[%c2_29, %c0_30, %c0_31, %c0_32], %34 {strides = array<i32>} : memref<3x2x16x22xf32, #tpu.memory_space<vmem>>, vector<1x1x16x22xf32>,
    %c1_33 = arith.constant 1 : index
    %c0_34 = arith.constant 0 : index
    %c0_35 = arith.constant 0 : index
    %c0_36 = arith.constant 0 : index
    %35 = vector.load %arg1[%c1_33, %c0_34, %c0_35, %c0_36] : memref<2x3x12x16xf32, #tpu.memory_space<vmem>>, vector<1x1x12x16xf32>
    %36 = vector.shape_cast %35 : vector<1x1x12x16xf32> to vector<12x16xf32>
    %37 = arith.truncf %36 : vector<12x16xf32> to vector<12x16xbf16>
    %cst_37 = arith.constant dense<0.000000e+00> : vector<12x22xf32>
    %38 = tpu.matmul %37, %1, %cst_37 {dimension_numbers = #tpu.dot_dimension_numbers<[1], [0], [0], [1], [0, 0, 1, 1], [], []>} : vector<12x16xbf16>, vector<16x22xbf16>, vector<12x22xf32> -> vector<12x22xf32>
    %39 = arith.truncf %38 : vector<12x22xf32> to vector<12x22xbf16>
    %cst_38 = arith.constant dense<0.000000e+00> : vector<16x22xf32>
    %40 = tpu.matmul %0, %39, %cst_38 {dimension_numbers = #tpu.dot_dimension_numbers<[1], [0], [0], [1], [0, 0, 1, 1], [], []>} : vector<16x12xbf16>, vector<12x22xbf16>, vector<16x22xf32> -> vector<16x22xf32>
    %cst_39 = arith.constant 0.00392156886 : f32
    %41 = vector.broadcast %cst_39 : f32 to vector<16x22xf32>
    %42 = arith.mulf %40, %41 : vector<16x22xf32>
    %c0_40 = arith.constant 0 : index
    %c1_41 = arith.constant 1 : index
    %c0_42 = arith.constant 0 : index
    %c0_43 = arith.constant 0 : index
    %43 = vector.load %arg4[%c0_40, %c1_41, %c0_42, %c0_43] : memref<3x2x16x22xf32, #tpu.memory_space<vmem>>, vector<1x1x16x22xf32>
    %44 = vector.shape_cast %43 : vector<1x1x16x22xf32> to vector<16x22xf32>
    %45 = vector.shape_cast %42 : vector<16x22xf32> to vector<1x1x16x22xf32>
    tpu.vector_store %arg4[%c0_40, %c1_41, %c0_42, %c0_43], %45 {strides = array<i32>} : memref<3x2x16x22xf32, #tpu.memory_space<vmem>>, vector<1x1x16x22xf32>,
    %c1_44 = arith.constant 1 : index
    %c1_45 = arith.constant 1 : index
    %c0_46 = arith.constant 0 : index
    %c0_47 = arith.constant 0 : index
    %46 = vector.load %arg1[%c1_44, %c1_45, %c0_46, %c0_47] : memref<2x3x12x16xf32, #tpu.memory_space<vmem>>, vector<1x1x12x16xf32>
    %47 = vector.shape_cast %46 : vector<1x1x12x16xf32> to vector<12x16xf32>
    %48 = arith.truncf %47 : vector<12x16xf32> to vector<12x16xbf16>
    %cst_48 = arith.constant dense<0.000000e+00> : vector<12x22xf32>
    %49 = tpu.matmul %48, %1, %cst_48 {dimension_numbers = #tpu.dot_dimension_numbers<[1], [0], [0], [1], [0, 0, 1, 1], [], []>} : vector<12x16xbf16>, vector<16x22xbf16>, vector<12x22xf32> -> vector<12x22xf32>
    %50 = arith.truncf %49 : vector<12x22xf32> to vector<12x22xbf16>
    %cst_49 = arith.constant dense<0.000000e+00> : vector<16x22xf32>
    %51 = tpu.matmul %0, %50, %cst_49 {dimension_numbers = #tpu.dot_dimension_numbers<[1], [0], [0], [1], [0, 0, 1, 1], [], []>} : vector<16x12xbf16>, vector<12x22xbf16>, vector<16x22xf32> -> vector<16x22xf32>
    %cst_50 = arith.constant 0.00392156886 : f32
    %52 = vector.broadcast %cst_50 : f32 to vector<16x22xf32>
    %53 = arith.mulf %51, %52 : vector<16x22xf32>
    %c1_51 = arith.constant 1 : index
    %c1_52 = arith.constant 1 : index
    %c0_53 = arith.constant 0 : index
    %c0_54 = arith.constant 0 : index
    %54 = vector.load %arg4[%c1_51, %c1_52, %c0_53, %c0_54] : memref<3x2x16x22xf32, #tpu.memory_space<vmem>>, vector<1x1x16x22xf32>
    %55 = vector.shape_cast %54 : vector<1x1x16x22xf32> to vector<16x22xf32>
    %56 = vector.shape_cast %53 : vector<16x22xf32> to vector<1x1x16x22xf32>
    tpu.vector_store %arg4[%c1_51, %c1_52, %c0_53, %c0_54], %56 {strides = array<i32>} : memref<3x2x16x22xf32, #tpu.memory_space<vmem>>, vector<1x1x16x22xf32>,
    %c1_55 = arith.constant 1 : index
    %c2_56 = arith.constant 2 : index
    %c0_57 = arith.constant 0 : index
    %c0_58 = arith.constant 0 : index
    %57 = vector.load %arg1[%c1_55, %c2_56, %c0_57, %c0_58] : memref<2x3x12x16xf32, #tpu.memory_space<vmem>>, vector<1x1x12x16xf32>
    %58 = vector.shape_cast %57 : vector<1x1x12x16xf32> to vector<12x16xf32>
    %59 = arith.truncf %58 : vector<12x16xf32> to vector<12x16xbf16>
    %cst_59 = arith.constant dense<0.000000e+00> : vector<12x22xf32>
    %60 = tpu.matmul %59, %1, %cst_59 {dimension_numbers = #tpu.dot_dimension_numbers<[1], [0], [0], [1], [0, 0, 1, 1], [], []>} : vector<12x16xbf16>, vector<16x22xbf16>, vector<12x22xf32> -> vector<12x22xf32>
    %61 = arith.truncf %60 : vector<12x22xf32> to vector<12x22xbf16>
    %cst_60 = arith.constant dense<0.000000e+00> : vector<16x22xf32>
    %62 = tpu.matmul %0, %61, %cst_60 {dimension_numbers = #tpu.dot_dimension_numbers<[1], [0], [0], [1], [0, 0, 1, 1], [], []>} : vector<16x12xbf16>, vector<12x22xbf16>, vector<16x22xf32> -> vector<16x22xf32>
    %cst_61 = arith.constant 0.00392156886 : f32
    %63 = vector.broadcast %cst_61 : f32 to vector<16x22xf32>
    %64 = arith.mulf %62, %63 : vector<16x22xf32>
    %c2_62 = arith.constant 2 : index
    %c1_63 = arith.constant 1 : index
    %c0_64 = arith.constant 0 : index
    %c0_65 = arith.constant 0 : index
    %65 = vector.load %arg4[%c2_62, %c1_63, %c0_64, %c0_65] : memref<3x2x16x22xf32, #tpu.memory_space<vmem>>, vector<1x1x16x22xf32>
    %66 = vector.shape_cast %65 : vector<1x1x16x22xf32> to vector<16x22xf32>
    %67 = vector.shape_cast %64 : vector<16x22xf32> to vector<1x1x16x22xf32>
    tpu.vector_store %arg4[%c2_62, %c1_63, %c0_64, %c0_65], %67 {strides = array<i32>} : memref<3x2x16x22xf32, #tpu.memory_space<vmem>>, vector<1x1x16x22xf32>,
    return
  }
  func.func @transform_0(%arg0: i32) -> (i32, i32, i32, i32) {
    %c0_i32 = arith.constant 0 : i32
    %c0_i32_0 = arith.constant 0 : i32
    %c0_i32_1 = arith.constant 0 : i32
    %c0_i32_2 = arith.constant 0 : i32
    return %arg0, %c0_i32, %c0_i32_0, %c0_i32_1 : i32, i32, i32, i32
  }
  func.func @transform_1(%arg0: i32) -> (i32, i32) {
    %c0_i32 = arith.constant 0 : i32
    %c0_i32_0 = arith.constant 0 : i32
    %c0_i32_1 = arith.constant 0 : i32
    return %c0_i32, %c0_i32_0 : i32, i32
  }
  func.func @transform_2(%arg0: i32) -> (i32, i32) {
    %c0_i32 = arith.constant 0 : i32
    %c0_i32_0 = arith.constant 0 : i32
    %c0_i32_1 = arith.constant 0 : i32
    return %c0_i32, %c0_i32_0 : i32, i32
  }
  func.func @transform_3(%arg0: i32) -> (i32, i32, i32, i32) {
    %c0_i32 = arith.constant 0 : i32
    %c0_i32_0 = arith.constant 0 : i32
    %c0_i32_1 = arith.constant 0 : i32
    %c0_i32_2 = arith.constant 0 : i32
    return %c0_i32, %arg0, %c0_i32_0, %c0_i32_1 : i32, i32, i32, i32
  }
}

</mosaic_0001>

<bundles_post_ra>
// kernel: tpu_custom_call.1
= control target key start
LH: loop header
LB: loop body
LE: loop exit
PB: predicated region body
PF: predicated region fallthrough
CT: control target
= control target key end

     0   :  { %8 = vsyncpa [#allocation3], 0  ;;  %s1349_s0 = inlined_call_operand.vmem [shape: f32[4,3,12,16], index: 0, kind: input, shape index: {}]   ;;  %s1350_s1 = inlined_call_operand.vmem [shape: bf16[16,12], index: 1, kind: input, shape index: {}]   ;;  %s1351_s2 = inlined_call_operand.vmem [shape: bf16[16,22], index: 2, kind: input, shape index: {}]   ;;  %s1352_s3 = inlined_call_operand.hbm [shape: f32[3,4,16,22], index: 3, kind: output, shape index: {}]  }
   0x1   :  { %10 = vsyncpa [#allocation3 + $0x1], 0  ;;  %s1156_s12 = smov 0   ;;  %s1158_s13 = smov 0  }
   0x2   :  { %s1160_s14 = smov 0   ;;  %s1162_s15 = smov 0  }
   0x3 LB: > { %s1177_s16 = sadd.s32 4294967295, %s1125_s15   ;;  %s890_s17 = sadd.s32 4294967294, %s1125_s15   ;;  %s1125_s15 = sphi %s1162_s15, %s1358_s15   ;;  %s1121_s14 = sphi %s1160_s14, %s1357_s14   ;;  %s1117_s13 = sphi %s1158_s13, %s1356_s13   ;;  %s1113_s12 = sphi %s1156_s12, %s1355_s12  }
   0x4   : > { %s1181_s18 = sadd.s32 1, %s1125_s15   ;;  %s91_s19 = sadd.s32 1, %s1121_s14 }
   0x5   : > { %s88_s20 = ssub.s32 %s1125_s15, %s1181_s18  ;;  %p101_p0 = scmp.ne.s32.totalorder %s1121_s14, %s1117_s13 }
   0x6   : > { %p89_p1 = scmp.eq.s32.totalorder %s88_s20, 0  ;;  %p102_p2 = scmp.eq.s32.totalorder %s1177_s16, 1 }
   0x7   : > { %p107_p3 = scmp.ne.s32.totalorder %s1117_s13, %s1113_s12  ;;  %p108_p4 = scmp.eq.s32.totalorder %s890_s17, 1 }
   0x8   : > { %s1192_s21 = scalar_select %p89_p1, %s1121_s14, %s91_s19  }
   0x9   : > { %p1194_p5 = por %p102_p2, %p101_p0  ;;  %p1198_p6 = por %p108_p4, %p107_p3 }
   0xa   : > { %p893_p7 = scmp.ge.s32.totalorder %s1125_s15, 1  ;;  %p142_p8 = scmp.lt.s32.totalorder %s1125_s15, 3 }
   0xc   : > { %p143_p9 = pnand %p893_p7, %p142_p8 }
   0xd   : > { %v1089_v0 = vld [vmem:[%s1351_s2] sm:$0xff] (!%p143_p9)   ;;  %v1127_v1 = vmov (!%p143_p9), 0.0   ;;  %s894_s26 = sshll.u32 (!%p143_p9), %s1177_s16, 1  ;;  %vm1128_vm0 = vmmov (!%p143_p9), 0   ;;  %vm189_vm1 = vcmask (!%p143_p9), 130048   ;;  %vm244_vm2 = vcmask (!%p143_p9), 1045504  }
   0xe   : > { %146 = sbr.rel (%p143_p9) target bundleno = 514 (0x202), region = 32  ;;  %961 = vmatprep.subr.bf16.mxu0 (!%p143_p9), %v1127_v1  ;;  %967 = vmatprep.subr.bf16.mxu1 (!%p143_p9), %v1127_v1  ;;  %p168_p10 = scmp.lt.s32.totalorder (!%p143_p9), %s894_s26, 3  ;;  %v1090_v26 = vld [vmem:[%s1350_s1] sm:$0xff] (!%p143_p9)   ;;  %vm240_vm3 = vcmask (!%p143_p9), 97280   ;;  %vm291_vm4 = vcmask (!%p143_p9), 179200  }
   0xf   : > { %962 = vmatpush3.bf16.msra.mxu0 (!%p143_p9), %v1089_v0  ;;  %963 = vmatprep.mubr.msk.bf16.mxu0 (!%p143_p9), %vm1128_vm0, %v1127_v1  ;;  %s164_s6 = sand.u32 (!%p143_p9), 1, %s1117_s13  }
  0x10   : > { %973 = vmatprep.subr.bf16.mxu0 (!%p143_p9), %v1127_v1  ;;  %969 = vmatprep.mubr.msk.bf16.mxu1 (!%p143_p9), %vm1128_vm0, %v1127_v1  ;;  %s1033_s7 = smul.u32 (!%p143_p9), 96, %s164_s6  ;;  %s785_s9 = scalar_lea.sflag (!%p143_p9), [#allocation3], %s164_s6 }
  0x12   : > { %s1285_s8 = scalar_lea.vmem (!%p143_p9), [#allocation2], %s1033_s7 }
  0x15   : > { %s1360_s26 = smov (!%p168_p10, %s894_s26), 3 }
  0x16   : > { %s1034_s27 = smul.u32 48, %s1360_s26 }
  0x18   : > { %s1218_s30 = scalar_lea.vmem %s1349_s0, %s1034_s27 }
  0x19   : > { %v180_v2 = vld [vmem:[%s1218_s30] sm:$0xff]  ;;  %v181_v3 = vld [vmem:[%s1218_s30 + $0x8] sm:$0xf]  ;;  %v900_v5 = vld [vmem:[%s1218_s30 + $0x10] sm:$0xff] }
  0x1a   : > { %v182_v4 = vpack.c.bf16 %v181_v3, %v180_v2  ;;  %v901_v6 = vld [vmem:[%s1218_s30 + $0x18] sm:$0xf]  ;;  %v906_v8 = vld [vmem:[%s1218_s30 + $0x20] sm:$0xff]  ;;  %v907_v9 = vld [vmem:[%s1218_s30 + $0x28] sm:$0xf] }
  0x1b   : > { %v297_v7 = vpack.c.bf16 %v901_v6, %v900_v5  ;;  %v395_v10 = vpack.c.bf16 %v907_v9, %v906_v8  ;;  %v912_v11 = vld [vmem:[%s1218_s30 + $0x30] sm:$0xff]  ;;  %v913_v12 = vld [vmem:[%s1218_s30 + $0x38] sm:$0xf]  ;;  %v918_v14 = vld [vmem:[%s1218_s30 + $0x40] sm:$0xff] }
  0x1c   : > { %964 = vmatmul.mubr.msk.bf16.vlgmr.msra.gmra.mrb[0].mxu0 %vm189_vm1, %v182_v4  ;;  %v493_v13 = vpack.c.bf16 %v913_v12, %v912_v11  ;;  %v919_v15 = vld [vmem:[%s1218_s30 + $0x48] sm:$0xf]  ;;  %v924_v17 = vld [vmem:[%s1218_s30 + $0x50] sm:$0xff]  ;;  %v925_v18 = vld [vmem:[%s1218_s30 + $0x58] sm:$0xf] }
  0x1d   : > { %974 = vmatpush3.bf16.msra.mxu0 %v1089_v0  ;;  %975 = vmatprep.mubr.msk.bf16.mxu0 %vm1128_vm0, %v1127_v1  ;;  %v591_v16 = vpack.c.bf16 %v919_v15, %v918_v14  ;;  %v689_v19 = vpack.c.bf16 %v925_v18, %v924_v17 }
  0x1e   : > { %985 = vmatprep.subr.bf16.mxu0 %v1127_v1 }
  0x24   : > { %976 = vmatmul.mubr.msk.bf16.vlgmr.msra.gmra.mrb[4].mxu0 %vm189_vm1, %v297_v7 }
  0x25   : > { %986 = vmatpush3.bf16.msra.mxu0 %v1089_v0  ;;  %987 = vmatprep.mubr.msk.bf16.mxu0 %vm1128_vm0, %v1127_v1 }
  0x26   : > { %997 = vmatprep.subr.bf16.mxu0 %v1127_v1 }
  0x2c   : > { %988 = vmatmul.mubr.msk.bf16.vlgmr.msra.gmra.mrb[8].mxu0 %vm189_vm1, %v395_v10 }
  0x2d   : > { %998 = vmatpush3.bf16.msra.mxu0 %v1089_v0  ;;  %999 = vmatprep.mubr.msk.bf16.mxu0 %vm1128_vm0, %v1127_v1 }
  0x2e   : > { %1009 = vmatprep.subr.bf16.mxu0 %v1127_v1 }
  0x34   : > { %1000 = vmatmul.mubr.msk.bf16.vlgmr.msra.gmra.mrb[12].mxu0 %vm189_vm1, %v493_v13 }
  0x35   : > { %1010 = vmatpush3.bf16.msra.mxu0 %v1089_v0  ;;  %1011 = vmatprep.mubr.msk.bf16.mxu0 %vm1128_vm0, %v1127_v1 }
  0x36   : > { %1021 = vmatprep.subr.bf16.mxu0 %v1127_v1 }
  0x3c   : > { %1012 = vmatmul.mubr.msk.bf16.vlgmr.msra.gmra.mrb[16].mxu0 %vm189_vm1, %v591_v16 }
  0x3d   : > { %1022 = vmatpush3.bf16.msra.mxu0 %v1089_v0  ;;  %1023 = vmatprep.mubr.msk.bf16.mxu0 %vm1128_vm0, %v1127_v1 }
  0x44   : > { %1024 = vmatmul.mubr.msk.bf16.vlgmr.msra.gmra.mrb[20].mxu0 %vm189_vm1, %v689_v19 }
  0xef   : > { %v227_v20 = vpop.f32.mrb[0].mxu0 }
  0xf0   : > { %v965_v21 = vpop.f32.mrb[1].mxu0 }
  0xf1   : > { %v230_v22 = vpop.f32.mrb[2].mxu0 }
  0xf2   : > { %v234_v23 = vpack.c.bf16 %v230_v22, %v227_v20  ;;  %v966_v24 = vpop.f32.mrb[3].mxu0 }
  0xf4   : > { %v246_v25 = vsel %vm244_vm2, %v234_v23, 0 }
  0xf5   : > { %968 = vmatpush3.bf16.msra.mxu1 %v246_v25 }
  0xf6   : > { %979 = vmatprep.subr.bf16.mxu1 %v1127_v1 }
  0xf7   : > { %v335_v27 = vpop.f32.mrb[4].mxu0 }
  0xf8   : > { %v977_v28 = vpop.f32.mrb[5].mxu0  ;;  %970 = vmatmul.mubr.msk.bf16.vlgmr.msra.gmra.mrb[0].mxu1 %vm240_vm3, %v1090_v26 }
  0xf9   : > { %v338_v29 = vpop.f32.mrb[6].mxu0  ;;  %981 = vmatprep.mubr.msk.bf16.mxu1 %vm1128_vm0, %v1127_v1 }
  0xfa   : > { %v342_v30 = vpack.c.bf16 %v338_v29, %v335_v27  ;;  %v978_v31 = vpop.f32.mrb[7].mxu0 }
  0xfc   : > { %v344_v32 = vsel %vm244_vm2, %v342_v30, 0 }
  0xfd   : > { %980 = vmatpush3.bf16.msra.mxu1 %v344_v32 }
  0xfe   : > { %991 = vmatprep.subr.bf16.mxu1 %v1127_v1 }
  0xff   : > { %v433_v33 = vpop.f32.mrb[8].mxu0 }
 0x100   : > { %v989_v34 = vpop.f32.mrb[9].mxu0  ;;  %982 = vmatmul.mubr.msk.bf16.vlgmr.msra.gmra.mrb[4].mxu1 %vm240_vm3, %v1090_v26 }
 0x101   : > { %v436_v35 = vpop.f32.mrb[10].mxu0  ;;  %993 = vmatprep.mubr.msk.bf16.mxu1 %vm1128_vm0, %v1127_v1 }
 0x102   : > { %v440_v36 = vpack.c.bf16 %v436_v35, %v433_v33  ;;  %v990_v37 = vpop.f32.mrb[11].mxu0 }
 0x104   : > { %v442_v38 = vsel %vm244_vm2, %v440_v36, 0 }
 0x105   : > { %992 = vmatpush3.bf16.msra.mxu1 %v442_v38 }
 0x106   : > { %1003 = vmatprep.subr.bf16.mxu1 %v1127_v1 }
 0x107   : > { %v531_v39 = vpop.f32.mrb[12].mxu0 }
 0x108   : > { %v1001_v40 = vpop.f32.mrb[13].mxu0  ;;  %994 = vmatmul.mubr.msk.bf16.vlgmr.msra.gmra.mrb[8].mxu1 %vm240_vm3, %v1090_v26 }
 0x109   : > { %v534_v41 = vpop.f32.mrb[14].mxu0  ;;  %1005 = vmatprep.mubr.msk.bf16.mxu1 %vm1128_vm0, %v1127_v1 }
 0x10a   : > { %v538_v42 = vpack.c.bf16 %v534_v41, %v531_v39  ;;  %v1002_v43 = vpop.f32.mrb[15].mxu0 }
 0x10c   : > { %v540_v44 = vsel %vm244_vm2, %v538_v42, 0 }
 0x10d   : > { %1004 = vmatpush3.bf16.msra.mxu1 %v540_v44 }
 0x10e   : > { %1015 = vmatprep.subr.bf16.mxu1 %v1127_v1 }
 0x10f   : > { %v629_v45 = vpop.f32.mrb[16].mxu0 }
 0x110   : > { %v1013_v46 = vpop.f32.mrb[17].mxu0  ;;  %1006 = vmatmul.mubr.msk.bf16.vlgmr.msra.gmra.mrb[12].mxu1 %vm240_vm3, %v1090_v26 }
 0x111   : > { %v632_v47 = vpop.f32.mrb[18].mxu0  ;;  %1017 = vmatprep.mubr.msk.bf16.mxu1 %vm1128_vm0, %v1127_v1 }
 0x112   : > { %v636_v48 = vpack.c.bf16 %v632_v47, %v629_v45  ;;  %v1014_v49 = vpop.f32.mrb[19].mxu0 }
 0x114   : > { %v638_v50 = vsel %vm244_vm2, %v636_v48, 0 }
 0x115   : > { %1016 = vmatpush3.bf16.msra.mxu1 %v638_v50 }
 0x116   : > { %1027 = vmatprep.subr.bf16.mxu1 %v1127_v1 }
 0x117   : > { %v727_v51 = vpop.f32.mrb[20].mxu0 }
 0x118   : > { %v1025_v52 = vpop.f32.mrb[21].mxu0  ;;  %1018 = vmatmul.mubr.msk.bf16.vlgmr.msra.gmra.mrb[16].mxu1 %vm240_vm3, %v1090_v26 }
 0x119   : > { %v730_v53 = vpop.f32.mrb[22].mxu0  ;;  %1029 = vmatprep.mubr.msk.bf16.mxu1 %vm1128_vm0, %v1127_v1 }
 0x11a   : > { %v734_v54 = vpack.c.bf16 %v730_v53, %v727_v51  ;;  %v1026_v55 = vpop.f32.mrb[23].mxu0 }
 0x11c   : > { %v736_v56 = vsel %vm244_vm2, %v734_v54, 0 }
 0x11d   : > { %1028 = vmatpush3.bf16.msra.mxu1 %v736_v56 }
 0x120   : > { %1030 = vmatmul.mubr.msk.bf16.vlgmr.msra.gmra.mrb[20].mxu1 %vm240_vm3, %v1090_v26 }
 0x1cb   : > { %v282_v57 = vpop.f32.mrb[0].mxu1 }
 0x1cc   : > { %v289_v58 = vmul.f32 0.003921569, %v282_v57  ;;  %v971_v59 = vpop.f32.mrb[1].mxu1 }
 0x1cd   : > { %v285_v60 = vpop.f32.mrb[2].mxu1 }
 0x1ce   : > { %292 = vst.msk [vmem:[%s1285_s8] sm:$0xff] %vm291_vm4, %v289_v58  ;;  %v290_v61 = vmul.f32 0.003921569, %v285_v60  ;;  %v972_v62 = vpop.f32.mrb[3].mxu1 }
 0x1d0   : > { %293 = vst.msk [vmem:[%s1285_s8 + $0x8] sm:$0xff] %vm291_vm4, %v290_v61 }
 0x1d3   : > { %v380_v63 = vpop.f32.mrb[4].mxu1 }
 0x1d4   : > { %v387_v0 = vmul.f32 0.003921569, %v380_v63  ;;  %v983_v1 = vpop.f32.mrb[5].mxu1 }
 0x1d5   : > { %v383_v2 = vpop.f32.mrb[6].mxu1 }
 0x1d6   : > { %904 = vst.msk [vmem:[%s1285_s8 + $0x20] sm:$0xff] %vm291_vm4, %v387_v0  ;;  %v388_v3 = vmul.f32 0.003921569, %v383_v2  ;;  %v984_v4 = vpop.f32.mrb[7].mxu1 }
 0x1d8   : > { %905 = vst.msk [vmem:[%s1285_s8 + $0x28] sm:$0xff] %vm291_vm4, %v388_v3 }
 0x1db   : > { %v478_v5 = vpop.f32.mrb[8].mxu1 }
 0x1dc   : > { %v485_v6 = vmul.f32 0.003921569, %v478_v5  ;;  %v995_v7 = vpop.f32.mrb[9].mxu1 }
 0x1dd   : > { %v481_v8 = vpop.f32.mrb[10].mxu1 }
 0x1de   : > { %910 = vst.msk [vmem:[%s1285_s8 + $0x40] sm:$0xff] %vm291_vm4, %v485_v6  ;;  %v486_v9 = vmul.f32 0.003921569, %v481_v8  ;;  %v996_v10 = vpop.f32.mrb[11].mxu1 }
 0x1e0   : > { %911 = vst.msk [vmem:[%s1285_s8 + $0x48] sm:$0xff] %vm291_vm4, %v486_v9 }
 0x1e3   : > { %v576_v11 = vpop.f32.mrb[12].mxu1 }
 0x1e4   : > { %v583_v12 = vmul.f32 0.003921569, %v576_v11  ;;  %v1007_v13 = vpop.f32.mrb[13].mxu1 }
 0x1e5   : > { %v579_v14 = vpop.f32.mrb[14].mxu1 }
 0x1e6   : > { %916 = vst.msk [vmem:[%s1285_s8 + $0x10] sm:$0xff] %vm291_vm4, %v583_v12  ;;  %v584_v15 = vmul.f32 0.003921569, %v579_v14  ;;  %v1008_v16 = vpop.f32.mrb[15].mxu1 }
 0x1e8   : > { %917 = vst.msk [vmem:[%s1285_s8 + $0x18] sm:$0xff] %vm291_vm4, %v584_v15 }
 0x1eb   : > { %v674_v17 = vpop.f32.mrb[16].mxu1 }
 0x1ec   : > { %v681_v18 = vmul.f32 0.003921569, %v674_v17  ;;  %v1019_v19 = vpop.f32.mrb[17].mxu1 }
 0x1ed   : > { %v677_v20 = vpop.f32.mrb[18].mxu1 }
 0x1ee   : > { %922 = vst.msk [vmem:[%s1285_s8 + $0x30] sm:$0xff] %vm291_vm4, %v681_v18  ;;  %v682_v21 = vmul.f32 0.003921569, %v677_v20  ;;  %v1020_v22 = vpop.f32.mrb[19].mxu1 }
 0x1f0   : > { %923 = vst.msk [vmem:[%s1285_s8 + $0x38] sm:$0xff] %vm291_vm4, %v682_v21 }
 0x1f3   : > { %v772_v23 = vpop.f32.mrb[20].mxu1 }
 0x1f4   : > { %v779_v24 = vmul.f32 0.003921569, %v772_v23  ;;  %v1031_v25 = vpop.f32.mrb[21].mxu1 }
 0x1f5   : > { %v775_v26 = vpop.f32.mrb[22].mxu1 }
 0x1f6   : > { %928 = vst.msk [vmem:[%s1285_s8 + $0x50] sm:$0xff] %vm291_vm4, %v779_v24  ;;  %v780_v27 = vmul.f32 0.003921569, %v775_v26  ;;  %v1032_v28 = vpop.f32.mrb[23].mxu1 }
 0x1f8   : > { %929 = vst.msk [vmem:[%s1285_s8 + $0x58] sm:$0xff] %vm291_vm4, %v780_v27 }
 0x1f9   : > { %s936_s10 = sshll.u32 %s1177_s16, 9  ;;  %s815_s11 = sshll.u32 %s1285_s8, 4  ;;  %s816_s11 = int_to_ptr.vmem [resolvable:$true] %s815_s11 }
 0x1fa   : > { %s798_s20 = scalar_lea.hbm %s1352_s3, %s936_s10  ;;  %s1129_s24 = smov 512  }
 0x1fb   : > { %1035 = sst [smem:[#allocation5]] (%p1194_p5), %s1129_s24  ;;  %s1130_s25 = smov 1024  }
 0x1fc   : > { %1036 = sst [smem:[#allocation5 + $0x1]] (%p1194_p5), %s1130_s25  ;;  %s1131_s26 = smov 4  }
 0x1fd   : > { %1037 = sst [smem:[#allocation5 + $0x2]] (%p1194_p5), %s1131_s26  ;;  %s1132_s27 = smov 128  }
 0x1fe   : > { %1038 = sst [smem:[#allocation5 + $0x3]] (%p1194_p5), %s1132_s27  ;;  %s1133_s16 = smov 8  }
 0x1ff   : > { %1039 = sst [smem:[#allocation5 + $0x4]] (%p1194_p5), %s1132_s27  ;;  %s1134_s28 = smov [#allocation4]  }
 0x200   : > { %1040 = sst [smem:[#allocation5 + $0x5]] (%p1194_p5), %s1133_s16  ;;  %s1135_s29 = smov 0  }
 0x201   : > { %1041 = dma.general (%p1194_p5), %s816_s11, 1536, %s798_s20, %s785_s9, %s1134_s28, [#allocation5], %s1135_s29, 0  }
 0x202 PF: > { %p1047_p11 = scmp.ge.s32.totalorder %s1125_s15, 2  ;;  %s843_s30 = sand.u32 1, %s1113_s12  }
 0x203   : > { %s844_s4 = scalar_lea.sflag [#allocation3], %s843_s30 }
 0x204   : > { %p1044_p12 = pnand %p1047_p11, %p1198_p6 }
 0x206   : > { %1108 = dma.done.wait (!%p1044_p12), %s844_s4, 1536  }
 0x207   : > { %1110 = vsyncadd (!%p1044_p12), %s844_s4, 4294965760  ;;  %p13_p13 = scmp.ge.s32.totalorder %s1181_s18, 4   ;;  %s1355_s12 = smov %s1117_s13 }
 0x208   : > { %s1356_s13 = smov %s1121_s14  ;;  %s1357_s14 = smov %s1192_s21 }
 0x209   : > { %s1358_s15 = smov %s1181_s18  ;;  %15 = sbr.rel (!%p13_p13) target bundleno = 3 (0x3), region = 82 }
 0x210   :  { %849 = vsyncpa [#allocation3], 1 }
 0x211   :  { %851 = vsyncpa [#allocation3 + $0x1], 1 }

</bundles_post_ra>
